<compile_context>
chip_gen: v7x
topology: tpu7x:2x2x1
jax: 0.10.0
libtpu: 0.0.40
codegen_flags: <defaults>
</compile_context>

<pallas_src>
import functools

import jax
import jax.numpy as jnp
from jax.experimental import pallas as pl
from jax.experimental.pallas import tpu as pltpu


def _round_up(v, m):
    return (v + m - 1) // m * m


def attention_kernel(x_ref, wq_ref, wk_ref, wv_ref, wo_ref, bo_ref, o_ref,
                     acc_ref, *, scale, compute_dtype, approx_recip):
    """One grid step = (one batch block) x (one head). Heads are reduced into acc_ref."""
    h = pl.program_id(1)

    b_blk, n, dp = x_ref.shape
    hdp = wq_ref.shape[-1]
    m = b_blk * n

    @pl.when(h == 0)
    def _init():
        acc_ref[...] = jnp.zeros_like(acc_ref)

    # (b_blk, n, dp) -> (m, dp): pack batch rows so the MXU M dim is filled.
    x = x_ref[...].reshape(m, dp).astype(compute_dtype)

    wq = wq_ref[0]            # (dp, hdp), already in compute_dtype
    wk = wk_ref[0]
    wv = wv_ref[0]

    # Per-head projections (f32 accumulation on the MXU). Scale folded into q.
    q = jnp.dot(x, wq, preferred_element_type=jnp.float32) * scale   # (m, hdp)
    k = jnp.dot(x, wk, preferred_element_type=jnp.float32)
    v = jnp.dot(x, wv, preferred_element_type=jnp.float32)

    # Split rows back into (batch, seq) so attention stays within each element.
    q = q.reshape(b_blk, n, hdp).astype(compute_dtype)
    k = k.reshape(b_blk, n, hdp).astype(compute_dtype)
    v = v.reshape(b_blk, n, hdp).astype(compute_dtype)

    # Batched attention over the batch block; contraction on the lane axis.
    dots = jnp.einsum('bqk,bjk->bqj', q, k,
                      preferred_element_type=jnp.float32)            # (b_blk, n, n)
    dots = dots - jnp.max(dots, axis=-1, keepdims=True)
    e = jnp.exp(dots)
    attn = e * pl.reciprocal(jnp.sum(e, axis=-1, keepdims=True),
                             approx=approx_recip)

    out = jnp.einsum('bqj,bjk->bqk', attn.astype(compute_dtype), v,
                     preferred_element_type=jnp.float32)              # (b_blk, n, hdp)
    out = out.reshape(m, hdp).astype(compute_dtype)

    # Per-head contribution of the output projection, accumulated across heads.
    acc_ref[...] += jnp.dot(out, wo_ref[0], preferred_element_type=jnp.float32)

    @pl.when(h == pl.num_programs(1) - 1)
    def _finalize():
        y = acc_ref[...] + bo_ref[...].astype(jnp.float32)            # (m, dp)
        o_ref[...] = y.reshape(b_blk, n, dp).astype(o_ref.dtype)      # one dense store


def attention_forward(x, w_qkv, w_out, b_out, *, heads,
                      compute_dtype=jnp.bfloat16, batch_block=None):
    """x: (B, N, D); w_qkv: (D, 3D); w_out: (D, D); b_out: (1, D)."""
    b, n, d = x.shape
    assert d % heads == 0, "dim must be divisible by heads"
    assert n % 8 == 0, "sequence length must be a multiple of 8"
    # TODO(synk): support n % 8 != 0 by padding keys + masking padded scores.

    hd = d // heads
    scale = float(d) ** (-0.5)        # old-ViT: full embedding dim, not head_dim

    # Lane-dense padding (last dims multiples of 128). Zero padding is exact:
    # padded contraction lanes multiply zero weights, padded output lanes are 0.
    d_pad = _round_up(d, 128)
    hd_pad = _round_up(hd, 128)

    # Restructure the packed weights into per-head slabs (parameter prep; for a
    # real model this is done once at load time). w_qkv columns = (qkv, h, hd).
    w_qkv_r = w_qkv.reshape(d, 3, heads, hd)
    wq_h = jnp.transpose(w_qkv_r[:, 0], (1, 0, 2))     # (heads, d, hd)
    wk_h = jnp.transpose(w_qkv_r[:, 1], (1, 0, 2))
    wv_h = jnp.transpose(w_qkv_r[:, 2], (1, 0, 2))
    wo_h = w_out.reshape(heads, hd, d)                 # rows are (h, hd)

    pad_dh = ((0, 0), (0, d_pad - d), (0, hd_pad - hd))
    pad_hd = ((0, 0), (0, hd_pad - hd), (0, d_pad - d))
    wq_h = jnp.pad(wq_h, pad_dh).astype(compute_dtype)
    wk_h = jnp.pad(wk_h, pad_dh).astype(compute_dtype)
    wv_h = jnp.pad(wv_h, pad_dh).astype(compute_dtype)
    wo_h = jnp.pad(wo_h, pad_hd).astype(compute_dtype)
    b_o = jnp.pad(b_out, ((0, 0), (0, d_pad - d))).astype(jnp.float32)
    x_p = jnp.pad(x, ((0, 0), (0, 0), (0, d_pad - d)))

    # Pack enough batch elements per grid step to feed ~128 MXU rows and
    # amortize the per-grid-step overhead. (On v7x, a larger leading grid axis
    # would also give megacore more parallel points; here we prioritize MXU M.)
    if batch_block is None:
        batch_block = min(b, max(1, 128 // n))
        while b % batch_block:
            batch_block -= 1
    assert b % batch_block == 0
    m_blk = batch_block * n

    kernel = functools.partial(
        attention_kernel,
        scale=scale,
        compute_dtype=compute_dtype,
        approx_recip=(compute_dtype != jnp.float32),
    )

    flops = (2 * b * n * d_pad * hd_pad * heads * 3        # q/k/v projections
             + 2 * b * heads * n * n * hd_pad * 2          # q@k^T and attn@v
             + 2 * b * n * hd_pad * d_pad * heads)         # output projection
    transcendentals = b * heads * n * n                    # exp
    bytes_accessed = (x_p.size * x_p.dtype.itemsize
                      + 3 * wq_h.size * wq_h.dtype.itemsize
                      + wo_h.size * wo_h.dtype.itemsize
                      + b_o.size * b_o.dtype.itemsize
                      + b * n * d_pad * x.dtype.itemsize)

    out_pad = pl.pallas_call(
        kernel,
        out_shape=jax.ShapeDtypeStruct((b, n, d_pad), x.dtype),
        grid_spec=pltpu.PrefetchScalarGridSpec(
            num_scalar_prefetch=0,
            grid=(b // batch_block, heads),                 # reduction axis last
            in_specs=[
                pl.BlockSpec((batch_block, n, d_pad), lambda i, h: (i, 0, 0)),
                pl.BlockSpec((1, d_pad, hd_pad), lambda i, h: (h, 0, 0)),
                pl.BlockSpec((1, d_pad, hd_pad), lambda i, h: (h, 0, 0)),
                pl.BlockSpec((1, d_pad, hd_pad), lambda i, h: (h, 0, 0)),
                pl.BlockSpec((1, hd_pad, d_pad), lambda i, h: (h, 0, 0)),
                pl.BlockSpec((1, d_pad), lambda i, h: (0, 0)),
            ],
            out_specs=pl.BlockSpec((batch_block, n, d_pad), lambda i, h: (i, 0, 0)),
            scratch_shapes=[pltpu.VMEM((m_blk, d_pad), jnp.float32)],
        ),
        compiler_params=pltpu.CompilerParams(
            dimension_semantics=("parallel", "arbitrary"),
        ),
        cost_estimate=pl.CostEstimate(
            flops=flops,
            transcendentals=transcendentals,
            bytes_accessed=bytes_accessed,
        ),
    )(x_p, wq_h, wk_h, wv_h, wo_h, b_o)

    return out_pad[:, :, :d]


def attention_reference(x, w_qkv, w_out, b_out, *, heads):
    """Pure-JAX reference mirroring the PyTorch forward (mask=None)."""
    b, n, d = x.shape
    hd = d // heads
    scale = float(d) ** (-0.5)
    qkv = x @ w_qkv                                            # (b, n, 3d)
    qkv = qkv.reshape(b, n, 3, heads, hd)
    q = jnp.transpose(qkv[:, :, 0], (0, 2, 1, 3))              # (b, h, n, hd)
    k = jnp.transpose(qkv[:, :, 1], (0, 2, 1, 3))
    v = jnp.transpose(qkv[:, :, 2], (0, 2, 1, 3))
    dots = jnp.einsum('bhid,bhjd->bhij', q, k) * scale
    attn = jax.nn.softmax(dots, axis=-1)
    out = jnp.einsum('bhij,bhjd->bhid', attn, v)               # (b, h, n, hd)
    out = jnp.transpose(out, (0, 2, 1, 3)).reshape(b, n, d)
    return out @ w_out + b_out


if __name__ == "__main__":
    B, N, DIM, HEADS = 2, 8, 32, 8

    key = jax.random.PRNGKey(0)
    kx, kq, kw, kb = jax.random.split(key, 4)

    x = jax.random.normal(kx, (B, N, DIM), dtype=jnp.float32)
    # Deterministic parameter init (Linear weights, input-major layout).
    w_qkv = jax.random.normal(kq, (DIM, 3 * DIM), dtype=jnp.float32) * 0.1
    w_out = jax.random.normal(kw, (DIM, DIM), dtype=jnp.float32) * 0.1
    b_out = jax.random.normal(kb, (1, DIM), dtype=jnp.float32) * 0.1

    ref = attention_reference(x, w_qkv, w_out, b_out, heads=HEADS)

    # Exactness check: f32 MXU operands, exact reciprocal.
    out_f32 = attention_forward(x, w_qkv, w_out, b_out, heads=HEADS,
                                compute_dtype=jnp.float32)
    out_f32 = jax.block_until_ready(out_f32)
    assert out_f32.shape == (B, N, DIM)
    assert jnp.allclose(out_f32, ref, atol=1e-3, rtol=1e-3), "f32 kernel mismatch"

    # Optimized path: bf16 MXU operands, f32 accumulation, EUP reciprocal.
    out_bf16 = attention_forward(x, w_qkv, w_out, b_out, heads=HEADS,
                                 compute_dtype=jnp.bfloat16)
    out_bf16 = jax.block_until_ready(out_bf16)
    assert out_bf16.shape == (B, N, DIM)
    assert jnp.allclose(out_bf16, ref, atol=3e-2, rtol=3e-2), "bf16 kernel mismatch"

    print("KERNEL_OK")
</pallas_src>

<mosaic_0001>
module attributes {stable_mosaic.version = 11 : i64} {
  func.func @attention_kernel(%arg0: i32, %arg1: i32, %arg2: memref<2x8x128xf32, #tpu.memory_space<vmem>>, %arg3: memref<1x128x128xf32, #tpu.memory_space<vmem>>, %arg4: memref<1x128x128xf32, #tpu.memory_space<vmem>>, %arg5: memref<1x128x128xf32, #tpu.memory_space<vmem>>, %arg6: memref<1x128x128xf32, #tpu.memory_space<vmem>>, %arg7: memref<1x128xf32, #tpu.memory_space<vmem>>, %arg8: memref<2x8x128xf32, #tpu.memory_space<vmem>>, %arg9: memref<16x128xf32, #tpu.memory_space<vmem>>) attributes {dimension_semantics = [#tpu.dimension_semantics<parallel>, #tpu.dimension_semantics<arbitrary>], iteration_bounds = array<i64: 1, 8>, scalar_prefetch = 0 : i64, scratch_operands = 1 : i64, tpu.core_type = #tpu.core_type<tc>, window_params = [{transform_indices = @transform_0, window_bounds = array<i64: 2, 8, 128>}, {transform_indices = @transform_1, window_bounds = array<i64: 1, 128, 128>}, {transform_indices = @transform_2, window_bounds = array<i64: 1, 128, 128>}, {transform_indices = @transform_3, window_bounds = array<i64: 1, 128, 128>}, {transform_indices = @transform_4, window_bounds = array<i64: 1, 128, 128>}, {pipeline_mode = #tpu.pipeline_mode<synchronous>, transform_indices = @transform_5, window_bounds = array<i64: 1, 128>}, {transform_indices = @transform_6, window_bounds = array<i64: 2, 8, 128>}]} {
    %c0_i32 = arith.constant 0 : i32
    %0 = arith.cmpi eq, %arg1, %c0_i32 : i32
    %1 = arith.extui %0 : i1 to i32
    %c0_i32_0 = arith.constant 0 : i32
    %2 = arith.cmpi ne, %1, %c0_i32_0 : i32
    scf.if %2 {
      %cst_28 = arith.constant 0.000000e+00 : f32
      %41 = vector.broadcast %cst_28 : f32 to vector<16x128xf32>
      %c0_29 = arith.constant 0 : index
      %c0_30 = arith.constant 0 : index
      %42 = vector.load %arg9[%c0_29, %c0_30] : memref<16x128xf32, #tpu.memory_space<vmem>>, vector<16x128xf32>
      tpu.vector_store %arg9[%c0_29, %c0_30], %41 {strides = array<i32>} : memref<16x128xf32, #tpu.memory_space<vmem>>, vector<16x128xf32>,
    } else {
    }
    %c0 = arith.constant 0 : index
    %c0_1 = arith.constant 0 : index
    %c0_2 = arith.constant 0 : index
    %3 = vector.load %arg2[%c0, %c0_1, %c0_2] : memref<2x8x128xf32, #tpu.memory_space<vmem>>, vector<2x8x128xf32>
    %4 = vector.shape_cast %3 : vector<2x8x128xf32> to vector<16x128xf32>
    %c0_3 = arith.constant 0 : index
    %c0_4 = arith.constant 0 : index
    %c0_5 = arith.constant 0 : index
    %5 = vector.load %arg3[%c0_3, %c0_4, %c0_5] : memref<1x128x128xf32, #tpu.memory_space<vmem>>, vector<1x128x128xf32>
    %6 = vector.shape_cast %5 : vector<1x128x128xf32> to vector<128x128xf32>
    %c0_6 = arith.constant 0 : index
    %c0_7 = arith.constant 0 : index
    %c0_8 = arith.constant 0 : index
    %7 = vector.load %arg4[%c0_6, %c0_7, %c0_8] : memref<1x128x128xf32, #tpu.memory_space<vmem>>, vector<1x128x128xf32>
    %8 = vector.shape_cast %7 : vector<1x128x128xf32> to vector<128x128xf32>
    %c0_9 = arith.constant 0 : index
    %c0_10 = arith.constant 0 : index
    %c0_11 = arith.constant 0 : index
    %9 = vector.load %arg5[%c0_9, %c0_10, %c0_11] : memref<1x128x128xf32, #tpu.memory_space<vmem>>, vector<1x128x128xf32>
    %10 = vector.shape_cast %9 : vector<1x128x128xf32> to vector<128x128xf32>
    %cst = arith.constant dense<0.000000e+00> : vector<16x128xf32>
    %11 = tpu.matmul %4, %6, %cst {dimension_numbers = #tpu.dot_dimension_numbers<[1], [0], [0], [1], [0, 0, 1, 1], [], []>} : vector<16x128xf32>, vector<128x128xf32>, vector<16x128xf32> -> vector<16x128xf32>
    %cst_12 = arith.constant 0.176776692 : f32
    %12 = vector.broadcast %cst_12 : f32 to vector<16x128xf32>
    %13 = arith.mulf %11, %12 : vector<16x128xf32>
    %cst_13 = arith.constant dense<0.000000e+00> : vector<16x128xf32>
    %14 = tpu.matmul %4, %8, %cst_13 {dimension_numbers = #tpu.dot_dimension_numbers<[1], [0], [0], [1], [0, 0, 1, 1], [], []>} : vector<16x128xf32>, vector<128x128xf32>, vector<16x128xf32> -> vector<16x128xf32>
    %cst_14 = arith.constant dense<0.000000e+00> : vector<16x128xf32>
    %15 = tpu.matmul %4, %10, %cst_14 {dimension_numbers = #tpu.dot_dimension_numbers<[1], [0], [0], [1], [0, 0, 1, 1], [], []>} : vector<16x128xf32>, vector<128x128xf32>, vector<16x128xf32> -> vector<16x128xf32>
    %16 = vector.shape_cast %13 : vector<16x128xf32> to vector<2x8x128xf32>
    %17 = vector.shape_cast %14 : vector<16x128xf32> to vector<2x8x128xf32>
    %18 = vector.shape_cast %15 : vector<16x128xf32> to vector<2x8x128xf32>
    "tpu.trace_start"() <{level = 10 : i32, message = "bqk,bjk->bqj"}> : () -> ()
    %cst_15 = arith.constant dense<0.000000e+00> : vector<2x8x8xf32>
    %19 = tpu.matmul %16, %17, %cst_15 {dimension_numbers = #tpu.dot_dimension_numbers<[2], [2], [1], [1], [0, 0, 0, 1, 1, 1], [0], [0]>} : vector<2x8x128xf32>, vector<2x8x128xf32>, vector<2x8x8xf32> -> vector<2x8x8xf32>
    "tpu.trace_stop"() : () -> ()
    %cst_16 = arith.constant dense<0xFF800000> : vector<2x8xf32>
    %20 = vector.multi_reduction <maximumf>, %19, %cst_16 [2] : vector<2x8x8xf32> to vector<2x8xf32>
    %21 = vector.shape_cast %20 : vector<2x8xf32> to vector<2x8x1xf32>
    %22 = vector.broadcast %21 : vector<2x8x1xf32> to vector<2x8x8xf32>
    %23 = arith.subf %19, %22 : vector<2x8x8xf32>
    %24 = math.exp %23 : vector<2x8x8xf32>
    %cst_17 = arith.constant dense<0.000000e+00> : vector<2x8xf32>
    %25 = vector.multi_reduction <add>, %24, %cst_17 [2] : vector<2x8x8xf32> to vector<2x8xf32>
    %26 = vector.shape_cast %25 : vector<2x8xf32> to vector<2x8x1xf32>
    %27 = tpu.reciprocal %26 : vector<2x8x1xf32> -> vector<2x8x1xf32>
    %28 = vector.broadcast %27 : vector<2x8x1xf32> to vector<2x8x8xf32>
    %29 = arith.mulf %24, %28 : vector<2x8x8xf32>
    "tpu.trace_start"() <{level = 10 : i32, message = "bqj,bjk->bqk"}> : () -> ()
    %cst_18 = arith.constant dense<0.000000e+00> : vector<2x8x128xf32>
    %30 = tpu.matmul %29, %18, %cst_18 {dimension_numbers = #tpu.dot_dimension_numbers<[2], [1], [1], [2], [0, 0, 0, 1, 1, 2], [0], [0]>} : vector<2x8x8xf32>, vector<2x8x128xf32>, vector<2x8x128xf32> -> vector<2x8x128xf32>
    "tpu.trace_stop"() : () -> ()
    %31 = vector.shape_cast %30 : vector<2x8x128xf32> to vector<16x128xf32>
    %c0_19 = arith.constant 0 : index
    %c0_20 = arith.constant 0 : index
    %32 = vector.load %arg9[%c0_19, %c0_20] : memref<16x128xf32, #tpu.memory_space<vmem>>, vector<16x128xf32>
    %c0_21 = arith.constant 0 : index
    %c0_22 = arith.constant 0 : index
    %c0_23 = arith.constant 0 : index
    %33 = vector.load %arg6[%c0_21, %c0_22, %c0_23] : memref<1x128x128xf32, #tpu.memory_space<vmem>>, vector<1x128x128xf32>
    %34 = vector.shape_cast %33 : vector<1x128x128xf32> to vector<128x128xf32>
    %cst_24 = arith.constant dense<0.000000e+00> : vector<16x128xf32>
    %35 = tpu.matmul %31, %34, %cst_24 {dimension_numbers = #tpu.dot_dimension_numbers<[1], [0], [0], [1], [0, 0, 1, 1], [], []>} : vector<16x128xf32>, vector<128x128xf32>, vector<16x128xf32> -> vector<16x128xf32>
    %36 = arith.addf %32, %35 : vector<16x128xf32>
    %c0_25 = arith.constant 0 : index
    %c0_26 = arith.constant 0 : index
    %37 = vector.load %arg9[%c0_25, %c0_26] : memref<16x128xf32, #tpu.memory_space<vmem>>, vector<16x128xf32>
    tpu.vector_store %arg9[%c0_25, %c0_26], %36 {strides = array<i32>} : memref<16x128xf32, #tpu.memory_space<vmem>>, vector<16x128xf32>,
    %c7_i32 = arith.constant 7 : i32
    %38 = arith.cmpi eq, %arg1, %c7_i32 : i32
    %39 = arith.extui %38 : i1 to i32
    %c0_i32_27 = arith.constant 0 : i32
    %40 = arith.cmpi ne, %39, %c0_i32_27 : i32
    scf.if %40 {
      %c0_28 = arith.constant 0 : index
      %c0_29 = arith.constant 0 : index
      %41 = vector.load %arg9[%c0_28, %c0_29] : memref<16x128xf32, #tpu.memory_space<vmem>>, vector<16x128xf32>
      %c0_30 = arith.constant 0 : index
      %c0_31 = arith.constant 0 : index
      %42 = vector.load %arg7[%c0_30, %c0_31] : memref<1x128xf32, #tpu.memory_space<vmem>>, vector<1x128xf32>
      %43 = vector.broadcast %42 : vector<1x128xf32> to vector<16x128xf32>
      %44 = arith.addf %41, %43 : vector<16x128xf32>
      %45 = vector.shape_cast %44 : vector<16x128xf32> to vector<2x8x128xf32>
      %c0_32 = arith.constant 0 : index
      %c0_33 = arith.constant 0 : index
      %c0_34 = arith.constant 0 : index
      %46 = vector.load %arg8[%c0_32, %c0_33, %c0_34] : memref<2x8x128xf32, #tpu.memory_space<vmem>>, vector<2x8x128xf32>
      tpu.vector_store %arg8[%c0_32, %c0_33, %c0_34], %45 {strides = array<i32>} : memref<2x8x128xf32, #tpu.memory_space<vmem>>, vector<2x8x128xf32>,
    } else {
    }
    return
  }
  func.func @transform_0(%arg0: i32, %arg1: i32) -> (i32, i32, i32) {
    %c0_i32 = arith.constant 0 : i32
    %c0_i32_0 = arith.constant 0 : i32
    %c0_i32_1 = arith.constant 0 : i32
    return %arg0, %c0_i32, %c0_i32_0 : i32, i32, i32
  }
  func.func @transform_1(%arg0: i32, %arg1: i32) -> (i32, i32, i32) {
    %c0_i32 = arith.constant 0 : i32
    %c0_i32_0 = arith.constant 0 : i32
    %c0_i32_1 = arith.constant 0 : i32
    return %arg1, %c0_i32, %c0_i32_0 : i32, i32, i32
  }
  func.func @transform_2(%arg0: i32, %arg1: i32) -> (i32, i32, i32) {
    %c0_i32 = arith.constant 0 : i32
    %c0_i32_0 = arith.constant 0 : i32
    %c0_i32_1 = arith.constant 0 : i32
    return %arg1, %c0_i32, %c0_i32_0 : i32, i32, i32
  }
  func.func @transform_3(%arg0: i32, %arg1: i32) -> (i32, i32, i32) {
    %c0_i32 = arith.constant 0 : i32
    %c0_i32_0 = arith.constant 0 : i32
    %c0_i32_1 = arith.constant 0 : i32
    return %arg1, %c0_i32, %c0_i32_0 : i32, i32, i32
  }
  func.func @transform_4(%arg0: i32, %arg1: i32) -> (i32, i32, i32) {
    %c0_i32 = arith.constant 0 : i32
    %c0_i32_0 = arith.constant 0 : i32
    %c0_i32_1 = arith.constant 0 : i32
    return %arg1, %c0_i32, %c0_i32_0 : i32, i32, i32
  }
  func.func @transform_5(%arg0: i32, %arg1: i32) -> (i32, i32) {
    %c0_i32 = arith.constant 0 : i32
    %c0_i32_0 = arith.constant 0 : i32
    %c0_i32_1 = arith.constant 0 : i32
    return %c0_i32, %c0_i32_0 : i32, i32
  }
  func.func @transform_6(%arg0: i32, %arg1: i32) -> (i32, i32, i32) {
    %c0_i32 = arith.constant 0 : i32
    %c0_i32_0 = arith.constant 0 : i32
    %c0_i32_1 = arith.constant 0 : i32
    return %arg0, %c0_i32, %c0_i32_0 : i32, i32, i32
  }
}

</mosaic_0001>

<bundles_post_ra>
// kernel: tpu_custom_call.1
= control target key start
LH: loop header
LB: loop body
LE: loop exit
PB: predicated region body
PF: predicated region fallthrough
CT: control target
= control target key end

     0   :  { %s2468_s0 = inlined_call_operand.hbm [shape: f32[2,8,128], index: 0, kind: input, shape index: {}]   ;;  %s2469_s1 = inlined_call_operand.hbm [shape: f32[8,128,128], index: 1, kind: input, shape index: {}]   ;;  %s2470_s2 = inlined_call_operand.hbm [shape: f32[8,128,128], index: 2, kind: input, shape index: {}]   ;;  %s2471_s3 = inlined_call_operand.hbm [shape: f32[8,128,128], index: 3, kind: input, shape index: {}]   ;;  %s2472_s4 = inlined_call_operand.hbm [shape: f32[8,128,128], index: 4, kind: input, shape index: {}]   ;;  %s2473_s5 = inlined_call_operand.vmem [shape: f32[1,128], index: 5, kind: input, shape index: {}]   ;;  %s2474_s6 = inlined_call_operand.hbm [shape: f32[2,8,128], index: 6, kind: output, shape index: {}]  }
   0x1   :  { %2488 = sst [smem:[#allocation22_spill]] %s2469_s1 }
   0x2   :  { %2489 = sst [smem:[#allocation23_spill]] %s2470_s2 }
   0x3   :  { %2490 = sst [smem:[#allocation24_spill]] %s2471_s3 }
   0x4   :  { %11 = vsyncpa [#allocation4], 0 }
   0x5   :  { %12 = vsyncpa [#allocation7], 0 }
   0x6   :  { %14 = vsyncpa [#allocation7 + $0x1], 0 }
   0x7   :  { %15 = vsyncpa [#allocation10], 0 }
   0x8   :  { %17 = vsyncpa [#allocation10 + $0x1], 0 }
   0x9   :  { %18 = vsyncpa [#allocation5], 0  ;;  %s2062_s21 = smov 0   ;;  %s2064_s22 = smov 0  }
   0xa   :  { %s2066_s23 = smov 0   ;;  %s2068_s24 = smov 0  }
   0xb   :  { %s2070_s25 = smov 0   ;;  %s2072_s26 = smov 0  }
   0xc LB: > { %2491 = sst [smem:[#allocation17_spill]] %s2000_s23  ;;  %s33_s27 = sadd.s32 1, %s2008_s25  ;;  %s2012_s26 = sphi %s2072_s26, %s24_s26   ;;  %s2008_s25 = sphi %s2070_s25, %s2517_s25   ;;  %s2004_s24 = sphi %s2068_s24, %s2516_s24   ;;  %s2000_s23 = sphi %s2066_s23, %s2515_s23   ;;  %s1996_s22 = sphi %s2064_s22, %s2519_s22   ;;  %s1992_s21 = sphi %s2062_s21, %s2518_s21  }
   0xd   : > { %2492 = sst [smem:[#allocation18_spill]] %s2008_s25  ;;  %s69_s28 = sadd.s32 1, %s2000_s23 }
   0xe   : > { %2493 = sst [smem:[#allocation19_spill]] %s2012_s26  ;;  %p34_p0 = scmp.ge.s32.totalorder %s33_s27, 8 }
   0xf   : > { %p76_p1 = scmp.ne.s32.totalorder %s2000_s23, %s1996_s22  ;;  %p77_p2 = scmp.eq.s32.totalorder %s2012_s26, 0 }
  0x10   : > { %s2521_s27 = smov (%p34_p0, %s33_s27), 0  ;;  %p1707_p5 = scmp.lt.s32.totalorder %s2012_s26, 8 }
  0x11   : > { %2494 = sst [smem:[#allocation20_spill]] %s2521_s27  ;;  %p2099_p3 = por %p77_p2, %p76_p1 }
  0x12   : > { %s66_s30 = ssub.s32 %s2008_s25, %s2521_s27  ;;  %s250_s7 = sand.u32 1, %s2012_s26  }
  0x13   : > { %p67_p4 = scmp.eq.s32.totalorder %s66_s30, 0  ;;  %s252_s8 = sand.u32 1, %s2000_s23  }
  0x14   : > { %s2111_s10 = sshll.u32 %s252_s8, 7  ;;  %s2114_s11 = sshll.u32 %s2008_s25, 11 }
  0x15   : > { %s2109_s9 = scalar_select %p67_p4, %s2000_s23, %s69_s28  }
  0x16   : > { %s2497_s1 = sld [smem:[#allocation22_spill]]  ;;  %s254_s15 = scalar_lea.vmem [#allocation6], %s2111_s10 }
  0x17   : > { %2496 = sst [smem:[#allocation21_spill]] %s2109_s9  ;;  %s261_s16 = sshll.u32 %s254_s15, 4  ;;  %s2123_s16 = int_to_ptr.vmem [resolvable:$true] %s261_s16 }
  0x18   : > { %p2127_p6 = pnand %p1707_p5, %p2099_p3  ;;  %s2499_s3 = sld [smem:[#allocation24_spill]] }
  0x19   : > { %s2139_s28 = scalar_lea.sflag [#allocation7], %s250_s7 }
  0x1a   : > { %s2498_s17 = scalar_select %p2127_p6, 1, 0 }
  0x1b   : > { %p2145_p8 = pneg %p2127_p6 }
  0x1c   : > { %s2120_s14 = scalar_lea.hbm %s2497_s1, %s2114_s11  ;;  %s1781_s13 = scalar_lea.hbm %s2497_s1, 16384 }
  0x1d   : > { %s1776_s30 = scalar_lea.hbm %s2120_s14, 2048  ;;  %p1782_p11 = scmp.lt.u32.totalorder %s2120_s14, %s2497_s1 }
  0x1e   : > { %s2135_s20 = scalar_lea.hbm %s2499_s3, %s2114_s11  ;;  %p1777_p7 = scmp.ne.s32.totalorder %s2120_s14, %s1776_s30 }
  0x1f   : > { %s2500_s8 = scalar_select %p2145_p8, 1, 0 }
  0x20   : > { %p1779_p9 = pnand %p2145_p8, %p1777_p7  ;;  %p1783_p12 = scmp.lt.u32.totalorder %s1781_s13, %s1776_s30 }
  0x21   : > { %p1785_p0 = scmp.lt.u32.totalorder %s1776_s30, %s2120_s14 }
  0x22   : > { %p1780_p10 = pneg %p1779_p9  ;;  %p1784_p13 = por %p1783_p12, %p1782_p11 }
  0x24   : > { %p1786_p1 = por %p1785_p0, %p1784_p13 }
  0x26   : > { %p1787_p2 = pnand %p1786_p1, %p1780_p10 }
  0x28   : > { %1790 = shalt.err (!%p1787_p2)
}
  0x29   : > { %s1791_s19 = scalar_lea.vmem %s2123_s16, 2048  ;;  %s2014_s29 = smov [#allocation6]  }
  0x2a   : > { %p1792_p3 = scmp.ne.s32.totalorder %s2123_s16, %s1791_s19  ;;  %s1796_s12 = sshll.u32 %s2014_s29, 4  ;;  %s1797_s12 = int_to_ptr.vmem [resolvable:$false] %s1796_s12 }
  0x2b   : > { %s1798_s15 = scalar_lea.vmem %s1797_s12, 4096  ;;  %p1799_p7 = scmp.lt.s32.totalorder %s2123_s16, %s1797_s12 }
  0x2c   : > { %p1794_p4 = pnand %p1792_p3, %p2145_p8  ;;  %p1800_p9 = scmp.lt.s32.totalorder %s1798_s15, %s1791_s19 }
  0x2e   : > { %p1795_p5 = pneg %p1794_p4  ;;  %p1801_p11 = por %p1800_p9, %p1799_p7 }
  0x30   : > { %p1802_p12 = pnand %p1801_p11, %p1795_p5 }
  0x32   : > { %1805 = shalt.err (!%p1802_p12)
}
  0x33   : > { %s2477_s30 = smov 128   ;;  %s2016_s13 = smov 8  }
  0x34   : > { %1696 = dma.hbm_to_vmem [thread:$0]  (!%p2127_p6), %s2120_s14, 2048, %s2123_s16, %s2139_s28, %s2477_s30, %s2477_s30, %s2016_s13  }
  0x35   : > { %s296_s18 = scalar_lea.vmem [#allocation9], %s2111_s10  ;;  %s2177_s29 = scalar_lea.sflag [#allocation10], %s250_s7 }
  0x36   : > { %s303_s19 = sshll.u32 %s296_s18, 4  ;;  %s1806_s12 = scalar_lea.hbm %s2135_s20, 2048  ;;  %s2173_s19 = int_to_ptr.vmem [resolvable:$true] %s303_s19 }
  0x37   : > { %p1807_p10 = scmp.ne.s32.totalorder %s2135_s20, %s1806_s12  ;;  %s1811_s27 = scalar_lea.hbm %s2499_s3, 16384 }
  0x38   : > { %p1812_p1 = scmp.lt.u32.totalorder %s2135_s20, %s2499_s3  ;;  %p1813_p2 = scmp.lt.u32.totalorder %s1811_s27, %s1806_s12 }
  0x39   : > { %p1809_p13 = pnand %p1807_p10, %p2145_p8  ;;  %p1815_p4 = scmp.lt.u32.totalorder %s1806_s12, %s2135_s20 }
  0x3a   : > { %p1814_p3 = por %p1813_p2, %p1812_p1 }
  0x3b   : > { %p1810_p0 = pneg %p1809_p13 }
  0x3c   : > { %p1816_p5 = por %p1815_p4, %p1814_p3 }
  0x3e   : > { %p1817_p7 = pnand %p1816_p5, %p1810_p0 }
  0x40   : > { %1820 = shalt.err (!%p1817_p7)
}
  0x41   : > { %s1821_s7 = scalar_lea.vmem %s2173_s19, 2048  ;;  %s2017_s1 = smov [#allocation9]  }
  0x42   : > { %p1822_p9 = scmp.ne.s32.totalorder %s2173_s19, %s1821_s7  ;;  %s1826_s14 = sshll.u32 %s2017_s1, 4  ;;  %s1827_s14 = int_to_ptr.vmem [resolvable:$false] %s1826_s14 }
  0x43   : > { %s1828_s25 = scalar_lea.vmem %s1827_s14, 4096  ;;  %p1829_p10 = scmp.lt.s32.totalorder %s2173_s19, %s1827_s14 }
  0x44   : > { %p1824_p11 = pnand %p1822_p9, %p2145_p8  ;;  %p1830_p13 = scmp.lt.s32.totalorder %s1828_s25, %s1821_s7 }
  0x46   : > { %p1825_p12 = pneg %p1824_p11  ;;  %p1831_p1 = por %p1830_p13, %p1829_p10 }
  0x48   : > { %p1832_p2 = pnand %p1831_p1, %p1825_p12 }
  0x4a   : > { %1835 = shalt.err (!%p1832_p2)
}
  0x4b   : > { %1702 = dma.hbm_to_vmem [thread:$0]  (!%p2127_p6), %s2135_s20, 2048, %s2173_s19, %s2177_s29, %s2477_s30, %s2477_s30, %s2016_s13  }
  0x4c   : > { %s2205_s27 = sadd.s32 4294967295, %s2012_s26   ;;  %p82_p0 = scmp.ne.s32.totalorder %s1996_s22, %s1992_s21 }
  0x4d   : > { %p2479_p3 = scmp.eq.s32.totalorder %s2205_s27, 0  ;;  %p1271_p4 = scmp.ge.s32.totalorder %s2012_s26, 1 }
  0x4e   : > { %p218_p5 = scmp.lt.s32.totalorder %s2012_s26, 9  ;;  %s2018_s20 = smov [#allocation3]  }
  0x4f   : > { %p2214_p7 = por %p2479_p3, %p82_p0  ;;  %s233_s18 = sshll.u32 %s2018_s20, 4  ;;  %s2222_s18 = int_to_ptr.vmem [resolvable:$true] %s233_s18 }
  0x50   : > { %p2218_p9 = pnand %p1271_p4, %p218_p5  ;;  %s2503_s2 = sld [smem:[#allocation23_spill]] }
  0x51   : > { %s2501_s9 = scalar_select %p2214_p7, 1, 0 }
  0x52   : > { %s2502_s16 = scalar_select %p2218_p9, 1, 0 }
  0x53   : > { %p1689_p11 = pneg %p2218_p9  ;;  %s275_s15 = scalar_lea.vmem [#allocation8], %s2111_s10 }
  0x54   : > { %s282_s7 = sshll.u32 %s275_s15, 4  ;;  %s2239_s7 = int_to_ptr.vmem [resolvable:$true] %s282_s7 }
  0x55   : > { %p2235_p12 = pnand %p1689_p11, %p2479_p3 }
  0x56   : > { %s2230_s12 = scalar_lea.hbm %s2503_s2, %s2114_s11  ;;  %s1841_s21 = scalar_lea.hbm %s2503_s2, 16384 }
  0x57   : > { %s2504_s1 = scalar_select %p2235_p12, 1, 0 }
  0x58   : > { %s1836_s14 = scalar_lea.hbm %s2230_s12, 2048  ;;  %p1842_p2 = scmp.lt.u32.totalorder %s2230_s12, %s2503_s2 }
  0x59   : > { %p1837_p10 = scmp.ne.s32.totalorder %s2230_s12, %s1836_s14  ;;  %p1843_p0 = scmp.lt.u32.totalorder %s1841_s21, %s1836_s14 }
  0x5a   : > { %p1845_p5 = scmp.lt.u32.totalorder %s1836_s14, %s2230_s12 }
  0x5b   : > { %p1839_p13 = pnand %p1837_p10, %p2145_p8  ;;  %p1844_p4 = por %p1843_p0, %p1842_p2 }
  0x5d   : > { %p1840_p1 = pneg %p1839_p13  ;;  %p1846_p11 = por %p1845_p5, %p1844_p4 }
  0x5f   : > { %p1847_p3 = pnand %p1846_p11, %p1840_p1 }
  0x61   : > { %1850 = shalt.err (!%p1847_p3)
}
  0x62   : > { %s1851_s15 = scalar_lea.vmem %s2239_s7, 2048  ;;  %s2019_s25 = smov [#allocation8]  }
  0x63   : > { %p1852_p10 = scmp.ne.s32.totalorder %s2239_s7, %s1851_s15  ;;  %s1856_s20 = sshll.u32 %s2019_s25, 4  ;;  %s1857_s20 = int_to_ptr.vmem [resolvable:$false] %s1856_s20 }
  0x64   : > { %s1858_s30 = scalar_lea.vmem %s1857_s20, 4096  ;;  %p1859_p9 = scmp.lt.s32.totalorder %s2239_s7, %s1857_s20 }
  0x65   : > { %p1854_p13 = pnand %p1852_p10, %p2145_p8  ;;  %p1860_p12 = scmp.lt.s32.totalorder %s1858_s30, %s1851_s15 }
  0x67   : > { %p1855_p7 = pneg %p1854_p13  ;;  %p1861_p2 = por %p1860_p12, %p1859_p9 }
  0x69   : > { %p1862_p0 = pnand %p1861_p2, %p1855_p7 }
  0x6b   : > { %1865 = shalt.err (!%p1862_p0)
}
  0x6c   : > { %s2505_s14 = smov 128   ;;  %s2270_s25 = scalar_lea.hbm %s2472_s4, %s2114_s11 }
  0x6d   : > { %1699 = dma.hbm_to_vmem [thread:$0]  (!%p2127_p6), %s2230_s12, 2048, %s2239_s7, %s2139_s28, %s2505_s14, %s2505_s14, %s2016_s13  }
  0x6e   : > { %s1866_s30 = scalar_lea.hbm %s2468_s0, 256  ;;  %p2506_p7 = scmp.ne.s32.totalorder %s2504_s1, 0 }
  0x6f   : > { %p1867_p3 = scmp.ne.s32.totalorder %s2468_s0, %s1866_s30  ;;  %p1873_p4 = scmp.lt.u32.totalorder %s1866_s30, %s2468_s0 }
  0x70   : > { %p1868_p9 = pneg %p2506_p7 }
  0x72   : > { %p1869_p12 = pnand %p1868_p9, %p1867_p3 }
  0x74   : > { %p1870_p1 = pneg %p1869_p12 }
  0x76   : > { %p1875_p5 = pnand %p1873_p4, %p1870_p1 }
  0x78   : > { %1878 = shalt.err (!%p1875_p5)
}
  0x79   : > { %s1879_s11 = scalar_lea.vmem %s2222_s18, 256  ;;  %p1887_p2 = scmp.lt.s32.totalorder %s2222_s18, %s2222_s18 }
  0x7a   : > { %p1880_p11 = scmp.ne.s32.totalorder %s2222_s18, %s1879_s11  ;;  %p1888_p0 = scmp.lt.s32.totalorder %s1879_s11, %s1879_s11 }
  0x7c   : > { %p1882_p10 = pnand %p1880_p11, %p1868_p9  ;;  %p1889_p6 = por %p1888_p0, %p1887_p2 }
  0x7e   : > { %p1883_p13 = pneg %p1882_p10 }
  0x80   : > { %p1890_p8 = pnand %p1889_p6, %p1883_p13 }
  0x82   : > { %1893 = shalt.err (!%p1890_p8)
}
  0x83   : > { %1692 = dma.hbm_to_vmem [thread:$0]  (!%p2506_p7), %s2468_s0, 256, %s2222_s18, [#allocation4], %s2505_s14, %s2505_s14, %s2016_s13  }
  0x84   : > { %s317_s23 = scalar_lea.vmem [#allocation11], %s2111_s10  ;;  %s1894_s28 = scalar_lea.hbm %s2270_s25, 2048 }
  0x85   : > { %s324_s26 = sshll.u32 %s317_s23, 4  ;;  %p1895_p6 = scmp.ne.s32.totalorder %s2270_s25, %s1894_s28  ;;  %s2297_s26 = int_to_ptr.vmem [resolvable:$true] %s324_s26 }
  0x86   : > { %p2507_p8 = scmp.ne.s32.totalorder %s2500_s8, 0  ;;  %s1899_s1 = scalar_lea.hbm %s2472_s4, 16384 }
  0x87   : > { %p1900_p12 = scmp.lt.u32.totalorder %s2270_s25, %s2472_s4  ;;  %p1901_p1 = scmp.lt.u32.totalorder %s1899_s1, %s1894_s28 }
  0x88   : > { %p1897_p3 = pnand %p1895_p6, %p2507_p8  ;;  %p1903_p7 = scmp.lt.u32.totalorder %s1894_s28, %s2270_s25 }
  0x89   : > { %p1902_p4 = por %p1901_p1, %p1900_p12 }
  0x8a   : > { %p1898_p9 = pneg %p1897_p3 }
  0x8b   : > { %p1904_p5 = por %p1903_p7, %p1902_p4 }
  0x8d   : > { %p1905_p11 = pnand %p1904_p5, %p1898_p9 }
  0x8f   : > { %1908 = shalt.err (!%p1905_p11)
}
  0x90   : > { %s1909_s10 = scalar_lea.vmem %s2297_s26, 2048  ;;  %s2020_s18 = smov [#allocation11]  }
  0x91   : > { %p1910_p10 = scmp.ne.s32.totalorder %s2297_s26, %s1909_s10  ;;  %s1914_s15 = sshll.u32 %s2020_s18, 4  ;;  %s1915_s15 = int_to_ptr.vmem [resolvable:$false] %s1914_s15 }
  0x92   : > { %s1916_s20 = scalar_lea.vmem %s1915_s15, 4096  ;;  %p1917_p0 = scmp.lt.s32.totalorder %s2297_s26, %s1915_s15 }
  0x93   : > { %p1912_p13 = pnand %p1910_p10, %p2507_p8  ;;  %p1918_p6 = scmp.lt.s32.totalorder %s1916_s20, %s1909_s10 }
  0x95   : > { %p1913_p2 = pneg %p1912_p13  ;;  %p1919_p3 = por %p1918_p6, %p1917_p0 }
  0x97   : > { %p1920_p12 = pnand %p1919_p3, %p1913_p2 }
  0x99   : > { %1923 = shalt.err (!%p1920_p12)
}
  0x9a   : > { %p2508_p9 = scmp.ne.s32.totalorder %s2498_s17, 0  ;;  %p2509_p8 = scmp.ne.s32.totalorder %s2502_s16, 0 }
  0x9b   : > { %p2510_p1 = scmp.eq.s32.totalorder (!%p2509_p8), %s2205_s27, 0 }
  0x9c   : > { %1705 = dma.hbm_to_vmem [thread:$0]  (!%p2508_p9), %s2270_s25, 2048, %s2297_s26, %s2177_s29, %s2505_s14, %s2505_s14, %s2016_s13  }
  0x9d   : > { %336 = sbr.rel (%p2509_p8) target bundleno = 1427 (0x593), region = 44 }
  0xa4   : > { %1975 = dma.done.wait (%p2510_p1), [#allocation4], 256   ;;  %p2511_p4 = pmov %p2510_p1 }
  0xa5   : > { %s342_s17 = sand.u32 1, %s2205_s27   ;;  %s344_s8 = sand.u32 1, %s1996_s22  }
  0xa6   : > { %1977 = vsyncadd (%p2511_p4), [#allocation4], 4294967040  ;;  %s1288_s30 = sshll.u32 %s344_s8, 7  ;;  %s343_s11 = scalar_lea.sflag [#allocation7], %s342_s17 }
  0xa7   : > { %s2332_s2 = scalar_lea.vmem [#allocation6], %s1288_s30  ;;  %p2512_p7 = scmp.ne.s32.totalorder %s2501_s9, 0 }
  0xa9   : > { %1979 = dma.done.wait (%p2512_p7), %s343_s11, 4096  }
  0xaa   : > { %1981 = vsyncadd (%p2512_p7), %s343_s11, 4294963200  ;;  %s2338_s13 = scalar_lea.vmem [#allocation8], %s1288_s30  ;;  %s361_s29 = scalar_lea.sflag [#allocation10], %s342_s17 }
  0xab   : > { %s2340_s16 = scalar_lea.vmem [#allocation9], %s1288_s30 }
  0xac   : > { %1983 = dma.done.wait (%p2512_p7), %s361_s29, 4096  }
  0xad   : > { %1985 = vsyncadd (%p2512_p7), %s361_s29, 4294963200  ;;  %s2346_s14 = scalar_lea.vmem [#allocation11], %s1288_s30  ;;  %p1292_p5 = scmp.ne.s32.totalorder %s2004_s24, 0 }
  0xae   : > { %v2021_v0 = vmov (!%p1292_p5), 0.0  }
  0xaf   : > { %417 = sbr.rel (%p1292_p5) target bundleno = 182 (0xb6), region = 68  ;;  %418 = vst [vmem:[#allocation2] sm:$0xff] (!%p1292_p5), %v2021_v0  ;;  %419 = vst [vmem:[#allocation2 + $0x8] sm:$0xff] (!%p1292_p5), %v2021_v0 }
  0xb6 PF: > { %v438_v1 = vld [vmem:[%s2338_s13] sm:$0xff]  ;;  %v439_v2 = vld [vmem:[%s2338_s13 + $0x8] sm:$0xff]  ;;  %v440_v6 = vld [vmem:[%s2338_s13 + $0x10] sm:$0xff]  ;;  %vm2023_vm0 = vmmov 0   ;;  %vm837_vm1 = vcmask 64512   ;;  %p1295_p11 = scmp.ne.s32.totalorder %s2004_s24, 7 }
  0xb7   : > { %v422_v3 = vld [vmem:[%s2332_s2] sm:$0xff]  ;;  %v1577_v4 = vpack.c.bf16 %v439_v2, %v438_v1  ;;  %v423_v5 = vld [vmem:[%s2332_s2 + $0x8] sm:$0xff]  ;;  %v441_v7 = vld [vmem:[%s2338_s13 + $0x18] sm:$0xff] }
  0xb8   : > { %v1545_v8 = vpack.c.bf16 %v423_v5, %v422_v3  ;;  %v1581_v9 = vpack.c.bf16 %v441_v7, %v440_v6  ;;  %v424_v10 = vld [vmem:[%s2332_s2 + $0x10] sm:$0xff]  ;;  %v425_v11 = vld [vmem:[%s2332_s2 + $0x18] sm:$0xff]  ;;  %v442_v12 = vld [vmem:[%s2338_s13 + $0x20] sm:$0xff] }
  0xb9   : > { %1578 = vmatprep.subr.bf16.mxu1 %v1577_v4  ;;  %v1549_v13 = vpack.c.bf16 %v425_v11, %v424_v10  ;;  %v443_v14 = vld [vmem:[%s2338_s13 + $0x28] sm:$0xff]  ;;  %v426_v15 = vld [vmem:[%s2332_s2 + $0x20] sm:$0xff]  ;;  %v444_v19 = vld [vmem:[%s2338_s13 + $0x30] sm:$0xff]  ;;  %v2022_v11 = vmov 0.0  }
  0xba   : > { %v427_v16 = vld [vmem:[%s2332_s2 + $0x28] sm:$0xff]  ;;  %1546 = vmatprep.subr.bf16.mxu0 %v1545_v8  ;;  %1580 = vmatpush3.bf16.msra.mxu1 %v1577_v4  ;;  %v1585_v17 = vpack.c.bf16 %v443_v14, %v442_v12  ;;  %v445_v20 = vld [vmem:[%s2338_s13 + $0x38] sm:$0xff]  ;;  %v428_v21 = vld [vmem:[%s2332_s2 + $0x30] sm:$0xff] }
  0xbb   : > { %1548 = vmatpush3.bf16.msra.mxu0 %v1545_v8  ;;  %1582 = vmatprep.subr.bf16.mxu1 %v1581_v9  ;;  %v1553_v18 = vpack.c.bf16 %v427_v16, %v426_v15  ;;  %v429_v22 = vld [vmem:[%s2332_s2 + $0x38] sm:$0xff]  ;;  %v1589_v23 = vpack.c.bf16 %v445_v20, %v444_v19  ;;  %v446_v25 = vld [vmem:[%s2338_s13 + $0x40] sm:$0xff]  ;;  %v447_v26 = vld [vmem:[%s2338_s13 + $0x48] sm:$0xff] }
  0xbc   : > { %1550 = vmatprep.subr.bf16.mxu0 %v1549_v13  ;;  %v1557_v24 = vpack.c.bf16 %v429_v22, %v428_v21  ;;  %v420_v27 = vld [vmem:[#allocation3] sm:$0xff]  ;;  %v430_v28 = vld [vmem:[%s2332_s2 + $0x40] sm:$0xff]  ;;  %v431_v29 = vld [vmem:[%s2332_s2 + $0x48] sm:$0xff]  ;;  %v1593_v30 = vpack.c.bf16 %v447_v26, %v446_v25 }
  0xbd   : > { %1452 = vmatprep.mubr.f32.mxu1 %v420_v27  ;;  %1417 = vmatprep.mubr.f32.mxu0 %v420_v27  ;;  %v1561_v31 = vpack.c.bf16 %v431_v29, %v430_v28  ;;  %v448_v32 = vld [vmem:[%s2338_s13 + $0x50] sm:$0xff]  ;;  %v449_v33 = vld [vmem:[%s2338_s13 + $0x58] sm:$0xff]  ;;  %v450_v38 = vld [vmem:[%s2338_s13 + $0x60] sm:$0xff] }
  0xbe   : > { %1584 = vmatpush3.bf16.msra.mxu1 %v1581_v9  ;;  %v432_v34 = vld [vmem:[%s2332_s2 + $0x50] sm:$0xff]  ;;  %v433_v35 = vld [vmem:[%s2332_s2 + $0x58] sm:$0xff]  ;;  %v1597_v36 = vpack.c.bf16 %v449_v33, %v448_v32  ;;  %v451_v39 = vld [vmem:[%s2338_s13 + $0x68] sm:$0xff] }
  0xbf   : > { %1552 = vmatpush3.bf16.msra.mxu0 %v1549_v13  ;;  %1586 = vmatprep.subr.bf16.mxu1 %v1585_v17  ;;  %v1565_v37 = vpack.c.bf16 %v433_v35, %v432_v34  ;;  %v434_v40 = vld [vmem:[%s2332_s2 + $0x60] sm:$0xff]  ;;  %v435_v41 = vld [vmem:[%s2332_s2 + $0x68] sm:$0xff]  ;;  %v1601_v42 = vpack.c.bf16 %v451_v39, %v450_v38  ;;  %v452_v44 = vld [vmem:[%s2338_s13 + $0x70] sm:$0xff] }
  0xc0   : > { %1554 = vmatprep.subr.bf16.mxu0 %v1553_v18  ;;  %v1569_v43 = vpack.c.bf16 %v435_v41, %v434_v40  ;;  %v453_v45 = vld [vmem:[%s2338_s13 + $0x78] sm:$0xff]  ;;  %v436_v46 = vld [vmem:[%s2332_s2 + $0x70] sm:$0xff]  ;;  %v454_v50 = vld [vmem:[%s2340_s16] sm:$0xff] }
  0xc1   : > { %v437_v47 = vld [vmem:[%s2332_s2 + $0x78] sm:$0xff]  ;;  %v1605_v48 = vpack.c.bf16 %v453_v45, %v452_v44  ;;  %v455_v51 = vld [vmem:[%s2340_s16 + $0x8] sm:$0xff]  ;;  %v456_v53 = vld [vmem:[%s2340_s16 + $0x10] sm:$0xff] }
  0xc2   : > { %1588 = vmatpush3.bf16.msra.mxu1 %v1585_v17  ;;  %v1573_v49 = vpack.c.bf16 %v437_v47, %v436_v46  ;;  %v1609_v52 = vpack.c.bf16 %v455_v51, %v454_v50  ;;  %v457_v54 = vld [vmem:[%s2340_s16 + $0x18] sm:$0xff]  ;;  %v458_v57 = vld [vmem:[%s2340_s16 + $0x20] sm:$0xff]  ;;  %v459_v58 = vld [vmem:[%s2340_s16 + $0x28] sm:$0xff] }
  0xc3   : > { %1556 = vmatpush3.bf16.msra.mxu0 %v1553_v18  ;;  %1590 = vmatprep.subr.bf16.mxu1 %v1589_v23  ;;  %v421_v55 = vld [vmem:[#allocation3 + $0x8] sm:$0xff]  ;;  %v1613_v56 = vpack.c.bf16 %v457_v54, %v456_v53  ;;  %v1617_v59 = vpack.c.bf16 %v459_v58, %v458_v57  ;;  %v460_v60 = vld [vmem:[%s2340_s16 + $0x30] sm:$0xff]  ;;  %v462_v63 = vld [vmem:[%s2340_s16 + $0x40] sm:$0xff] }
  0xc4   : > { %1558 = vmatprep.subr.bf16.mxu0 %v1557_v24  ;;  %v461_v61 = vld [vmem:[%s2340_s16 + $0x38] sm:$0xff]  ;;  %v463_v0 = vld [vmem:[%s2340_s16 + $0x48] sm:$0xff]  ;;  %v464_v2 = vld [vmem:[%s2340_s16 + $0x50] sm:$0xff] }
  0xc5   : > { %v1621_v62 = vpack.c.bf16 %v461_v61, %v460_v60  ;;  %v1625_v1 = vpack.c.bf16 %v463_v0, %v462_v63  ;;  %v465_v3 = vld [vmem:[%s2340_s16 + $0x58] sm:$0xff]  ;;  %v466_v5 = vld [vmem:[%s2340_s16 + $0x60] sm:$0xff]  ;;  %v467_v6 = vld [vmem:[%s2340_s16 + $0x68] sm:$0xff] }
  0xc6   : > { %1592 = vmatpush3.bf16.msra.mxu1 %v1589_v23  ;;  %v1629_v4 = vpack.c.bf16 %v465_v3, %v464_v2  ;;  %v1633_v7 = vpack.c.bf16 %v467_v6, %v466_v5  ;;  %v468_v8 = vld [vmem:[%s2340_s16 + $0x70] sm:$0xff]  ;;  %v469_v9 = vld [vmem:[%s2340_s16 + $0x78] sm:$0xff]  ;;  %v1008_v38 = vld [vmem:[%s2346_s14] sm:$0xff] }
  0xc7   : > { %1560 = vmatpush3.bf16.msra.mxu0 %v1557_v24  ;;  %1594 = vmatprep.subr.bf16.mxu1 %v1593_v30  ;;  %v1637_v10 = vpack.c.bf16 %v469_v9, %v468_v8  ;;  %v1009_v39 = vld [vmem:[%s2346_s14 + $0x8] sm:$0xff]  ;;  %v1011_v44 = vld [vmem:[%s2346_s14 + $0x18] sm:$0xff]  ;;  %v1014_v51 = vld [vmem:[%s2346_s14 + $0x30] sm:$0xff] }
  0xc8   : > { %1562 = vmatprep.subr.bf16.mxu0 %v1561_v31  ;;  %v1016_v54 = vld [vmem:[%s2346_s14 + $0x40] sm:$0xff]  ;;  %v1018_v57 = vld [vmem:[%s2346_s14 + $0x50] sm:$0xff]  ;;  %v1019_v58 = vld [vmem:[%s2346_s14 + $0x58] sm:$0xff] }
  0xc9   : > { %v1020_v60 = vld [vmem:[%s2346_s14 + $0x60] sm:$0xff]  ;;  %v1021_v61 = vld [vmem:[%s2346_s14 + $0x68] sm:$0xff]  ;;  %v1022_v63 = vld [vmem:[%s2346_s14 + $0x70] sm:$0xff] }
  0xca   : > { %1596 = vmatpush3.bf16.msra.mxu1 %v1593_v30  ;;  %v1023_v0 = vld [vmem:[%s2346_s14 + $0x78] sm:$0xff]  ;;  %v1007_v6 = vld [vmem:[#allocation2 + $0x8] sm:$0xff] }
  0xcb   : > { %1564 = vmatpush3.bf16.msra.mxu0 %v1561_v31  ;;  %1598 = vmatprep.subr.bf16.mxu1 %v1597_v36 }
  0xcc   : > { %1566 = vmatprep.subr.bf16.mxu0 %v1565_v37 }
  0xce   : > { %1600 = vmatpush3.bf16.msra.mxu1 %v1597_v36 }
  0xcf   : > { %1568 = vmatpush3.bf16.msra.mxu0 %v1565_v37  ;;  %1602 = vmatprep.subr.bf16.mxu1 %v1601_v42 }
  0xd0   : > { %1570 = vmatprep.subr.bf16.mxu0 %v1569_v43 }
  0xd2   : > { %1604 = vmatpush3.bf16.msra.mxu1 %v1601_v42  ;;  %v1641_v42 = vpack.c.bf16 %v1009_v39, %v1008_v38 }
  0xd3   : > { %1572 = vmatpush3.bf16.msra.mxu0 %v1569_v43  ;;  %1606 = vmatprep.subr.bf16.mxu1 %v1605_v48  ;;  %v1010_v43 = vld [vmem:[%s2346_s14 + $0x10] sm:$0xff] }
  0xd4   : > { %1574 = vmatprep.subr.bf16.mxu0 %v1573_v49  ;;  %v1645_v47 = vpack.c.bf16 %v1011_v44, %v1010_v43 }
  0xd6   : > { %1608 = vmatpush3.bf16.msra.mxu1 %v1605_v48  ;;  %v1012_v48 = vld [vmem:[%s2346_s14 + $0x20] sm:$0xff] }
  0xd7   : > { %1576 = vmatpush3.bf16.msra.mxu0 %v1573_v49  ;;  %1500 = vmatprep.subr.mxu1 %v2022_v11  ;;  %v1013_v49 = vld [vmem:[%s2346_s14 + $0x28] sm:$0xff] }
  0xd8   : > { %1610 = vmatprep.subr.bf16.mxu0 %v1609_v52  ;;  %v1649_v50 = vpack.c.bf16 %v1013_v49, %v1012_v48 }
  0xd9   : > { %1453 = vmatmul.mubr.f32.vlgmr.msra.gmra.mrb[0].mxu1 %v421_v55 }
  0xda   : > { %1418 = vmatmul.mubr.f32.vlgmr.msra.gmra.mrb[0].mxu0 %v421_v55  ;;  %1502 = vmatprep.mubr.msk.f32.mxu1 %vm2023_vm0, %v2022_v11 }
  0xdb   : > { %1612 = vmatpush3.bf16.msra.mxu0 %v1609_v52  ;;  %1487 = vmatprep.mubr.f32.mxu0 %v420_v27  ;;  %v1015_v52 = vld [vmem:[%s2346_s14 + $0x38] sm:$0xff] }
  0xdc   : > { %1614 = vmatprep.subr.bf16.mxu0 %v1613_v56  ;;  %v1653_v53 = vpack.c.bf16 %v1015_v52, %v1014_v51 }
  0xdf   : > { %1616 = vmatpush3.bf16.msra.mxu0 %v1613_v56 }
  0xe0   : > { %1618 = vmatprep.subr.bf16.mxu0 %v1617_v59 }
  0xe3   : > { %1620 = vmatpush3.bf16.msra.mxu0 %v1617_v59  ;;  %v1661_v59 = vpack.c.bf16 %v1019_v58, %v1018_v57 }
  0xe4   : > { %1622 = vmatprep.subr.bf16.mxu0 %v1621_v62 }
  0xe7   : > { %1624 = vmatpush3.bf16.msra.mxu0 %v1621_v62  ;;  %v1665_v62 = vpack.c.bf16 %v1021_v61, %v1020_v60 }
  0xe8   : > { %1626 = vmatprep.subr.bf16.mxu0 %v1625_v1 }
  0xeb   : > { %1628 = vmatpush3.bf16.msra.mxu0 %v1625_v1  ;;  %v1669_v1 = vpack.c.bf16 %v1023_v0, %v1022_v63 }
  0xec   : > { %1630 = vmatprep.subr.bf16.mxu0 %v1629_v4 }
  0xef   : > { %1632 = vmatpush3.bf16.msra.mxu0 %v1629_v4 }
  0xf0   : > { %1634 = vmatprep.subr.bf16.mxu0 %v1633_v7 }
  0xf3   : > { %1636 = vmatpush3.bf16.msra.mxu0 %v1633_v7  ;;  %v1006_v7 = vld [vmem:[#allocation2] sm:$0xff] }
  0xf4   : > { %1638 = vmatprep.subr.bf16.mxu0 %v1637_v10 }
  0xf7   : > { %1640 = vmatpush3.bf16.msra.mxu0 %v1637_v10 }
  0xf8   : > { %1490 = vmatprep.subr.mxu0 %v2022_v11 }
  0xfa   : > { %1488 = vmatmul.mubr.f32.vlgmr.msra.gmra.mrb[2].mxu0 %v421_v55  ;;  %v1017_v55 = vld [vmem:[%s2346_s14 + $0x48] sm:$0xff] }
  0xfb   : > { %1492 = vmatprep.mubr.msk.f32.mxu0 %vm2023_vm0, %v2022_v11  ;;  %v1657_v56 = vpack.c.bf16 %v1017_v55, %v1016_v54 }
 0x1ac   : > { %v1454_v12 = vpop.f32.mrb[0].mxu1 }
 0x1ad   : > { %v1419_v13 = vpop.f32.mrb[0].mxu0  ;;  %v613_v14 = vpop.f32.mrb[1].mxu1 }
 0x1ae   : > { %v536_v15 = vpop.f32.mrb[1].mxu0  ;;  %1491 = vmatpush3.xpose.msra.mxu0 %v613_v14  ;;  %v546_v17 = vmul.f32 0.17677669, %v1419_v13  ;;  %v1296_v13 = vld [vmem:[%s2473_s5] ss:$0 sm:$0xff] (!%p1295_p11) }
 0x1af   : > { %v545_v16 = vmul.f32 0.17677669, %v536_v15  ;;  %1495 = vmatprep.subr.mxu0 %v2022_v11 }
 0x1b1   : > { %1493 = vmatmul.mubr.f32.vlgmr.msra.gmra.mrb[4].mxu0 %v545_v16 }
 0x1b2   : > { %1496 = vmatpush3.xpose.msra.mxu0 %v1454_v12  ;;  %1497 = vmatprep.mubr.msk.f32.mxu0 %vm2023_vm0, %v2022_v11 }
 0x1b5   : > { %1498 = vmatmul.mubr.f32.vlgmr.msra.gmra.mrb[6].mxu0 %v546_v17 }
 0x1cd   : > { %v1489_v18 = vpop.f32.mrb[2].mxu0 }
 0x1ce   : > { %v688_v19 = vpop.f32.mrb[3].mxu0 }
 0x1cf   : > { %1501 = vmatpush3.msra.mxu1 %v688_v19 }
 0x1d0   : > { %1505 = vmatprep.subr.mxu1 %v2022_v11 }
 0x284   : > { %v763_v20 = vpop.f32.mrb[4].mxu0 }
 0x285   : > { %v1494_v21 = vpop.f32.mrb[5].mxu0  ;;  %v838_v22 = vsel %vm837_vm1, %v763_v20, -inf }
 0x286   : > { %839 = vmax.xlane.f32.xlu0 %v838_v22 }
 0x288   : > { %v833_v23 = vpop.f32.mrb[6].mxu0 }
 0x289   : > { %v1499_v24 = vpop.f32.mrb[7].mxu0  ;;  %v841_v25 = vsel %vm837_vm1, %v833_v23, -inf }
 0x28a   : > { %842 = vmax.xlane.f32.xlu0 %v841_v25 }
 0x313   : > { %v840_v26 = vpop.xlane.xlu0 %839 }
 0x314   : > { %v844_v27 = vsub.f32 %v763_v20, %v840_v26 }
 0x316   : > { %v846_v28 = vmul.f32 1.442695, %v844_v27 }
 0x317   : > { %v843_v29 = vpop.xlane.xlu0 %842 }
 0x318   : > { %1768 = vpow2.f32 %v846_v28  ;;  %v845_v30 = vsub.f32 %v833_v23, %v843_v29 }
 0x31a   : > { %v848_v31 = vmul.f32 1.442695, %v845_v30 }
 0x31c   : > { %1770 = vpow2.f32 %v848_v31 }
 0x322   : > { %v1769_v32 = vpop.eup %1768 }
 0x323   : > { %v850_v33 = vsel %vm837_vm1, %v1769_v32, 0.0 }
 0x324   : > { %851 = vadd.xlane.f32.xlu1 %v850_v33 }
 0x326   : > { %v1771_v34 = vpop.eup %1770 }
 0x327   : > { %v853_v35 = vsel %vm837_vm1, %v1771_v34, 0.0 }
 0x328   : > { %854 = vadd.xlane.f32.xlu1 %v853_v35 }
 0x3b1   : > { %v852_v36 = vpop.xlane.xlu1 %851 }
 0x3b2   : > { %1772 = vrcp.f32 %v852_v36 }
 0x3b5   : > { %v855_v37 = vpop.xlane.xlu1 %854 }
 0x3b6   : > { %1774 = vrcp.f32 %v855_v37 }
 0x3bc   : > { %v1773_v40 = vpop.eup %1772 }
 0x3bd   : > { %v858_v41 = vmul.f32 %v1773_v40, %v1769_v32 }
 0x3bf   : > { %1503 = vmatmul.mubr.msk.f32.vlgmr.msra.gmra.mrb[2].mxu1 %vm837_vm1, %v858_v41 }
 0x3c0   : > { %v1775_v45 = vpop.eup %1774  ;;  %1506 = vmatpush3.msra.mxu1 %v1489_v18  ;;  %1507 = vmatprep.mubr.msk.f32.mxu1 %vm2023_vm0, %v2022_v11 }
 0x3c1   : > { %v859_v46 = vmul.f32 %v1775_v45, %v1771_v34  ;;  %1642 = vmatprep.subr.bf16.mxu1 %v1641_v42 }
 0x3c3   : > { %1508 = vmatmul.mubr.msk.f32.vlgmr.msra.gmra.mrb[4].mxu1 %vm837_vm1, %v859_v46 }
 0x3c4   : > { %1644 = vmatpush3.bf16.msra.mxu1 %v1641_v42 }
 0x3c5   : > { %1646 = vmatprep.subr.bf16.mxu1 %v1645_v47 }
 0x3c8   : > { %1648 = vmatpush3.bf16.msra.mxu1 %v1645_v47 }
 0x3c9   : > { %1650 = vmatprep.subr.bf16.mxu1 %v1649_v50 }
 0x3cc   : > { %1652 = vmatpush3.bf16.msra.mxu1 %v1649_v50 }
 0x3cd   : > { %1654 = vmatprep.subr.bf16.mxu1 %v1653_v53 }
 0x3d0   : > { %1656 = vmatpush3.bf16.msra.mxu1 %v1653_v53 }
 0x3d1   : > { %1658 = vmatprep.subr.bf16.mxu1 %v1657_v56 }
 0x3d4   : > { %1660 = vmatpush3.bf16.msra.mxu1 %v1657_v56 }
 0x3d5   : > { %1662 = vmatprep.subr.bf16.mxu1 %v1661_v59 }
 0x3d8   : > { %1664 = vmatpush3.bf16.msra.mxu1 %v1661_v59 }
 0x3d9   : > { %1666 = vmatprep.subr.bf16.mxu1 %v1665_v62 }
 0x3dc   : > { %1668 = vmatpush3.bf16.msra.mxu1 %v1665_v62 }
 0x3dd   : > { %1670 = vmatprep.subr.bf16.mxu1 %v1669_v1 }
 0x3e0   : > { %1672 = vmatpush3.bf16.msra.mxu1 %v1669_v1 }
 0x492   : > { %v929_v2 = vpop.f32.mrb[2].mxu1 }
 0x493   : > { %v1504_v3 = vpop.f32.mrb[3].mxu1  ;;  %1542 = vmatprep.mubr.f32.mxu1 %v929_v2 }
 0x496   : > { %v1002_v4 = vpop.f32.mrb[4].mxu1 }
 0x497   : > { %v1509_v5 = vpop.f32.mrb[5].mxu1  ;;  %1543 = vmatmul.mubr.f32.vlgmr.msra.gmra.mrb[6].mxu1 %v1002_v4 }
 0x568   : > { %1106 = sbr.rel (%p1295_p11) target bundleno = 1401 (0x579), region = 72 }
 0x56a   : > { %v1544_v8 = vpop.f32.mrb[6].mxu1 }
 0x56b   : > { %v1100_v9 = vadd.f32 %v1544_v8, %v1007_v6  ;;  %v1090_v10 = vpop.f32.mrb[7].mxu1 }
 0x56c   : > { %v1099_v11 = vadd.f32 %v1090_v10, %v1006_v7 }
 0x56d   : > { %1102 = vst [vmem:[#allocation2 + $0x8] sm:$0xff] %v1100_v9 }
 0x56e   : > { %1101 = vst [vmem:[#allocation2] sm:$0xff] %v1099_v11 }
 0x574   : > { %v1108_v14 = vld [vmem:[#allocation2 + $0x8] sm:$0xff] }
 0x575   : > { %v1107_v12 = vld [vmem:[#allocation2] sm:$0xff]  ;;  %v1117_v16 = vadd.f32 %v1296_v13, %v1108_v14 }
 0x576   : > { %v1116_v15 = vadd.f32 %v1296_v13, %v1107_v12 }
 0x577   : > { %1119 = vst [vmem:[#allocation12 + $0x8] sm:$0xff] %v1117_v16 }
 0x578   : > { %1118 = vst [vmem:[#allocation12] sm:$0xff] %v1116_v15 }
 0x579 PF: > { %p1709_p10 = scmp.eq.s32.totalorder %s2205_s27, 7  ;;  %s2024_s3 = smov [#allocation12]  }
 0x57a   : > { %s1129_s23 = sshll.u32 %s2024_s3, 4  ;;  %s1130_s23 = int_to_ptr.vmem [resolvable:$true] %s1129_s23 }
 0x57b   : > { %s1924_s26 = scalar_lea.vmem %s1130_s23, 256  ;;  %p1931_p6 = scmp.lt.s32.totalorder %s1130_s23, %s1130_s23 }
 0x57c   : > { %p1925_p13 = scmp.ne.s32.totalorder %s1130_s23, %s1924_s26  ;;  %p1932_p3 = scmp.lt.s32.totalorder %s1924_s26, %s1924_s26 }
 0x57e   : > { %p1926_p2 = pnand %p1925_p13, %p1709_p10  ;;  %p1933_p12 = por %p1932_p3, %p1931_p6 }
 0x580   : > { %p1927_p0 = pneg %p1926_p2 }
 0x582   : > { %p1934_p9 = pnand %p1933_p12, %p1927_p0 }
 0x584   : > { %1937 = shalt.err (!%p1934_p9)
}
 0x585   : > { %s1938_s12 = scalar_lea.hbm %s2474_s6, 256 }
 0x586   : > { %p1939_p8 = scmp.ne.s32.totalorder %s2474_s6, %s1938_s12  ;;  %p1944_p7 = scmp.lt.u32.totalorder %s1938_s12, %s2474_s6 }
 0x588   : > { %p1940_p1 = pnand %p1939_p8, %p1709_p10 }
 0x58a   : > { %p1941_p4 = pneg %p1940_p1 }
 0x58c   : > { %p1946_p5 = pnand %p1944_p7, %p1941_p4 }
 0x58e   : > { %1949 = shalt.err (!%p1946_p5)
}
 0x58f   : > { %s2025_s10 = smov 128   ;;  %s2026_s18 = smov 8  }
 0x590   : > { %1686 = dma.vmem_to_hbm [thread:$0]  (%p1709_p10), %s1130_s23, 256, %s2474_s6, [#allocation5], %s2025_s10, %s2025_s10, %s2026_s18  }
 0x591   : > { %1987 = dma.done.wait (%p1709_p10), [#allocation5], 256  }
 0x592   : > { %1989 = vsyncadd (%p1709_p10), [#allocation5], 4294967040 }
 0x593 PF: > { %s2513_s17 = sld [smem:[#allocation19_spill]]  ;;  %s2514_s8 = sld [smem:[#allocation17_spill]] }
 0x594   : > { %s2515_s23 = sld [smem:[#allocation21_spill]]  ;;  %s2516_s24 = sld [smem:[#allocation18_spill]] }
 0x595   : > { %s2517_s25 = sld [smem:[#allocation20_spill]]  ;;  %s2518_s21 = smov %s1996_s22 }
 0x599   : > { %s24_s26 = sadd.s32 1, %s2513_s17   ;;  %s2519_s22 = smov %s2514_s8 }
 0x59a   : > { %p21_p11 = scmp.ge.s32.totalorder %s24_s26, 10  }
 0x59c   :  { %23 = sbr.rel (!%p21_p11) target bundleno = 12 (0xc), region = 131 }
 0x5a3   :  { %1145 = vsyncpa [#allocation4], 1 }
 0x5a4   :  { %1147 = vsyncpa [#allocation4 + $0x1], 1 }
 0x5a5   :  { %1148 = vsyncpa [#allocation7], 1 }
 0x5a6   :  { %1150 = vsyncpa [#allocation7 + $0x1], 1 }
 0x5a7   :  { %1151 = vsyncpa [#allocation10], 1 }
 0x5a8   :  { %1153 = vsyncpa [#allocation10 + $0x1], 1 }
 0x5a9   :  { %1154 = vsyncpa [#allocation5], 1 }
 0x5aa   :  { %1156 = vsyncpa [#allocation5 + $0x1], 1 }

</bundles_post_ra>
